<compile_context>
chip_gen: v7x
topology: tpu7x:2x2x1
jax: 0.10.0
libtpu: 0.0.40
codegen_flags: <defaults>
</compile_context>

<pallas_src>
import jax
import jax.numpy as jnp
from jax.experimental import pallas as pl
from jax.experimental.pallas import tpu as pltpu

STATE_SIZE = 12 * 4   # 48
HIDDEN = 128
OUT = 1

TB_MAX = 16384                 # batch-tile rows (multiple of 128)
SMALL_BATCH_XLA_CUTOFF = 1024  # below this, plain XLA beats the pallas_call


def _round_up(x, m):
    return (x + m - 1) // m * m


def _pick_tile(batch, tb_max):
    """Batch tile: multiple of 128 rows, capped at tb_max; for large batches
    guarantee >= 2 grid steps (v7x megacore + DMA/compute overlap)."""
    if batch <= 4096:
        return min(tb_max, _round_up(batch, 128))
    half = _round_up((batch + 1) // 2, 128)
    return min(tb_max, half)


def critic_kernel(x_ref, w1t_ref, b1_ref, w2_ref, b2_ref, o_ref):
    # x_ref:   (TB, 48)   input dtype (f32 or bf16)
    # w1t_ref: (48, 128)  bf16  (fc1.weight, pre-transposed, pre-cast)
    # b1_ref:  (1, 128)   f32
    # w2_ref:  (1, 128)   f32   (q.weight)
    # b2_ref:  (1, 1)     f32
    # o_ref:   (TB, 1)    f32
    #
    # fc1 on the MXU: deliberate bf16 single-pass matmul, f32 accumulation.
    x = x_ref[...].astype(jnp.bfloat16)
    h = jnp.dot(x, w1t_ref[...], preferred_element_type=jnp.float32)
    h = jnp.maximum(h + b1_ref[...], 0.0)
    # q head on VPU (mul) + XLU (lane reduce) — no second MXU matmul.
    v = jnp.sum(h * w2_ref[...], axis=-1, keepdims=True) + b2_ref[...]
    o_ref[...] = v.astype(o_ref.dtype)


def critic_forward(state, w1, b1, w2, b2, *, tb_max=TB_MAX, force_pallas=False):
    """Critic forward pass.

    state: (B, 48)
    w1:    (128, 48)  = fc1.weight (PyTorch (out, in) layout)
    b1:    (128,)     = fc1.bias
    w2:    (1, 128)   = q.weight
    b2:    (1,)       = q.bias
    returns (B, 1) float32
    """
    B = state.shape[0]

    if B < SMALL_BATCH_XLA_CUTOFF and not force_pallas:
        # Small-batch path: let XLA fuse the tiny MLP; explicit precision so
        # f32 operands don't silently truncate to a single bf16 MXU pass.
        s = state.astype(jnp.float32)
        h = jnp.maximum(
            jnp.dot(s, w1.astype(jnp.float32).T,
                    precision=jax.lax.Precision.HIGHEST) + b1.astype(jnp.float32),
            0.0)
        return (jnp.dot(h, w2.astype(jnp.float32).T,
                        precision=jax.lax.Precision.HIGHEST)
                + b2.astype(jnp.float32)).reshape(B, OUT)

    tb = _pick_tile(B, tb_max)
    grid = (pl.cdiv(B, tb),)

    # Tiny one-time weight prep (no full-input copies in the wrapper).
    w1t = w1.T.astype(jnp.bfloat16)                    # (48, 128)
    b1c = b1.reshape(1, HIDDEN).astype(jnp.float32)    # (1, 128)
    w2c = w2.reshape(OUT, HIDDEN).astype(jnp.float32)  # (1, 128)
    b2c = b2.reshape(OUT, OUT).astype(jnp.float32)     # (1, 1)

    flops = 2 * B * STATE_SIZE * HIDDEN + 3 * B * HIDDEN
    bytes_accessed = (state.size * state.dtype.itemsize
                      + 4 * B * OUT + 2 * w1t.size
                      + 4 * (b1c.size + w2c.size + b2c.size))

    out = pl.pallas_call(
        critic_kernel,
        out_shape=jax.ShapeDtypeStruct((B, OUT), jnp.float32),
        grid_spec=pl.GridSpec(
            grid=grid,
            in_specs=[
                # streamed input tiles, auto double-buffered along batch
                pl.BlockSpec((tb, STATE_SIZE), lambda i: (i, 0)),
                # weights / biases: constant block index -> VMEM-resident
                pl.BlockSpec((STATE_SIZE, HIDDEN), lambda i: (0, 0)),
                pl.BlockSpec((1, HIDDEN), lambda i: (0, 0)),
                pl.BlockSpec((OUT, HIDDEN), lambda i: (0, 0)),
                pl.BlockSpec((OUT, OUT), lambda i: (0, 0)),
            ],
            out_specs=pl.BlockSpec((tb, OUT), lambda i: (i, 0)),
        ),
        compiler_params=pltpu.CompilerParams(
            dimension_semantics=("parallel",),       # v7x: shard tiles over 2 TCs
            vmem_limit_bytes=40 * 1024 * 1024,       # headroom for tb=16384 tiles
        ),
        cost_estimate=pl.CostEstimate(
            flops=flops, transcendentals=0, bytes_accessed=bytes_accessed),
    )(state, w1t, b1c, w2c, b2c)

    return out  # (B, 1)


def init_params(key):
    """PyTorch-style uniform(-1/sqrt(fan_in), 1/sqrt(fan_in)) init,
    weights stored in nn.Linear's (out_features, in_features) layout."""
    k1, k2, k3, k4 = jax.random.split(key, 4)
    bound1 = 1.0 / jnp.sqrt(jnp.float32(STATE_SIZE))
    bound2 = 1.0 / jnp.sqrt(jnp.float32(HIDDEN))
    w1 = jax.random.uniform(k1, (HIDDEN, STATE_SIZE), jnp.float32, -bound1, bound1)
    b1 = jax.random.uniform(k2, (HIDDEN,), jnp.float32, -bound1, bound1)
    w2 = jax.random.uniform(k3, (OUT, HIDDEN), jnp.float32, -bound2, bound2)
    b2 = jax.random.uniform(k4, (OUT,), jnp.float32, -bound2, bound2)
    return w1, b1, w2, b2


def _reference(state, w1, b1, w2, b2):
    h = jnp.maximum(
        jnp.dot(state, w1.T, precision=jax.lax.Precision.HIGHEST) + b1, 0.0)
    return jnp.dot(h, w2.T, precision=jax.lax.Precision.HIGHEST) + b2


if __name__ == "__main__":
    key = jax.random.PRNGKey(0)
    k_state, k_state2, k_params = jax.random.split(key, 3)
    w1, b1, w2, b2 = init_params(k_params)

    # Small single-env-style batch: takes the plain-XLA dispatch path.
    B = 8
    state = jax.random.normal(k_state, (B, STATE_SIZE), dtype=jnp.float32)
    out = jax.block_until_ready(critic_forward(state, w1, b1, w2, b2))
    ref = _reference(state, w1, b1, w2, b2)
    assert out.shape == (B, OUT)
    assert jnp.allclose(out, ref, atol=1e-4, rtol=1e-4)

    # Force the Pallas kernel with a small tile cap: multi-tile grid (grid=(3,))
    # including a non-divisible boundary block (300 = 2*128 + 44 rows).
    B2 = 300
    state2 = jax.random.normal(k_state2, (B2, STATE_SIZE), dtype=jnp.float32)
    out2 = jax.block_until_ready(
        critic_forward(state2, w1, b1, w2, b2, tb_max=128, force_pallas=True))
    ref2 = _reference(state2, w1, b1, w2, b2)
    assert out2.shape == (B2, OUT)
    # fc1 runs bf16 x bf16 -> f32-accumulate on the MXU: ~1e-3 relative error
    # vs the f32 reference is expected for a value critic; tolerance reflects it.
    assert jnp.allclose(out2, ref2, atol=2e-2, rtol=2e-2)

    print("KERNEL_OK")
</pallas_src>

<mosaic_0001>
module attributes {stable_mosaic.version = 11 : i64} {
  func.func @critic_kernel(%arg0: i32, %arg1: memref<128x48xf32, #tpu.memory_space<vmem>>, %arg2: memref<48x128xbf16, #tpu.memory_space<vmem>>, %arg3: memref<1x128xf32, #tpu.memory_space<vmem>>, %arg4: memref<1x128xf32, #tpu.memory_space<vmem>>, %arg5: memref<1x1xf32, #tpu.memory_space<vmem>>, %arg6: memref<128x1xf32, #tpu.memory_space<vmem>>) attributes {dimension_semantics = [#tpu.dimension_semantics<parallel>], iteration_bounds = array<i64: 3>, scalar_prefetch = 0 : i64, scratch_operands = 0 : i64, tpu.core_type = #tpu.core_type<tc>, window_params = [{transform_indices = @transform_0, window_bounds = array<i64: 128, 48>}, {pipeline_mode = #tpu.pipeline_mode<synchronous>, transform_indices = @transform_1, window_bounds = array<i64: 48, 128>}, {pipeline_mode = #tpu.pipeline_mode<synchronous>, transform_indices = @transform_2, window_bounds = array<i64: 1, 128>}, {pipeline_mode = #tpu.pipeline_mode<synchronous>, transform_indices = @transform_3, window_bounds = array<i64: 1, 128>}, {pipeline_mode = #tpu.pipeline_mode<synchronous>, transform_indices = @transform_4, window_bounds = array<i64: 1, 1>}, {transform_indices = @transform_5, window_bounds = array<i64: 128, 1>}]} {
    %c0 = arith.constant 0 : index
    %c0_0 = arith.constant 0 : index
    %0 = vector.load %arg1[%c0, %c0_0] : memref<128x48xf32, #tpu.memory_space<vmem>>, vector<128x48xf32>
    %1 = arith.truncf %0 : vector<128x48xf32> to vector<128x48xbf16>
    %c0_1 = arith.constant 0 : index
    %c0_2 = arith.constant 0 : index
    %2 = vector.load %arg2[%c0_1, %c0_2] : memref<48x128xbf16, #tpu.memory_space<vmem>>, vector<48x128xbf16>
    %cst = arith.constant dense<0.000000e+00> : vector<128x128xf32>
    %3 = tpu.matmul %1, %2, %cst {dimension_numbers = #tpu.dot_dimension_numbers<[1], [0], [0], [1], [0, 0, 1, 1], [], []>} : vector<128x48xbf16>, vector<48x128xbf16>, vector<128x128xf32> -> vector<128x128xf32>
    %c0_3 = arith.constant 0 : index
    %c0_4 = arith.constant 0 : index
    %4 = vector.load %arg3[%c0_3, %c0_4] : memref<1x128xf32, #tpu.memory_space<vmem>>, vector<1x128xf32>
    %5 = vector.broadcast %4 : vector<1x128xf32> to vector<128x128xf32>
    %6 = arith.addf %3, %5 : vector<128x128xf32>
    %cst_5 = arith.constant 0.000000e+00 : f32
    %7 = vector.broadcast %cst_5 : f32 to vector<128x128xf32>
    %8 = arith.maximumf %6, %7 : vector<128x128xf32>
    %c0_6 = arith.constant 0 : index
    %c0_7 = arith.constant 0 : index
    %9 = vector.load %arg4[%c0_6, %c0_7] : memref<1x128xf32, #tpu.memory_space<vmem>>, vector<1x128xf32>
    %10 = vector.broadcast %9 : vector<1x128xf32> to vector<128x128xf32>
    %11 = arith.mulf %8, %10 : vector<128x128xf32>
    %cst_8 = arith.constant dense<0.000000e+00> : vector<128xf32>
    %12 = vector.multi_reduction <add>, %11, %cst_8 [1] : vector<128x128xf32> to vector<128xf32>
    %13 = vector.shape_cast %12 : vector<128xf32> to vector<128x1xf32>
    %c0_9 = arith.constant 0 : index
    %c0_10 = arith.constant 0 : index
    %14 = vector.load %arg5[%c0_9, %c0_10] : memref<1x1xf32, #tpu.memory_space<vmem>>, vector<1x1xf32>
    %15 = vector.broadcast %14 : vector<1x1xf32> to vector<128x1xf32>
    %16 = arith.addf %13, %15 : vector<128x1xf32>
    %c0_11 = arith.constant 0 : index
    %c0_12 = arith.constant 0 : index
    %17 = vector.load %arg6[%c0_11, %c0_12] : memref<128x1xf32, #tpu.memory_space<vmem>>, vector<128x1xf32>
    tpu.vector_store %arg6[%c0_11, %c0_12], %16 {strides = array<i32>} : memref<128x1xf32, #tpu.memory_space<vmem>>, vector<128x1xf32>,
    return
  }
  func.func @transform_0(%arg0: i32) -> (i32, i32) {
    %c0_i32 = arith.constant 0 : i32
    %c0_i32_0 = arith.constant 0 : i32
    return %arg0, %c0_i32 : i32, i32
  }
  func.func @transform_1(%arg0: i32) -> (i32, i32) {
    %c0_i32 = arith.constant 0 : i32
    %c0_i32_0 = arith.constant 0 : i32
    %c0_i32_1 = arith.constant 0 : i32
    return %c0_i32, %c0_i32_0 : i32, i32
  }
  func.func @transform_2(%arg0: i32) -> (i32, i32) {
    %c0_i32 = arith.constant 0 : i32
    %c0_i32_0 = arith.constant 0 : i32
    %c0_i32_1 = arith.constant 0 : i32
    return %c0_i32, %c0_i32_0 : i32, i32
  }
  func.func @transform_3(%arg0: i32) -> (i32, i32) {
    %c0_i32 = arith.constant 0 : i32
    %c0_i32_0 = arith.constant 0 : i32
    %c0_i32_1 = arith.constant 0 : i32
    return %c0_i32, %c0_i32_0 : i32, i32
  }
  func.func @transform_4(%arg0: i32) -> (i32, i32) {
    %c0_i32 = arith.constant 0 : i32
    %c0_i32_0 = arith.constant 0 : i32
    %c0_i32_1 = arith.constant 0 : i32
    return %c0_i32, %c0_i32_0 : i32, i32
  }
  func.func @transform_5(%arg0: i32) -> (i32, i32) {
    %c0_i32 = arith.constant 0 : i32
    %c0_i32_0 = arith.constant 0 : i32
    return %arg0, %c0_i32 : i32, i32
  }
}

</mosaic_0001>

<bundles_post_ra>
// kernel: tpu_custom_call.1
= control target key start
LH: loop header
LB: loop body
LE: loop exit
PB: predicated region body
PF: predicated region fallthrough
CT: control target
= control target key end

     0   :  { %s1353_s0 = inlined_call_operand.vmem [shape: f32[300,48], index: 0, kind: input, shape index: {}]   ;;  %s1354_s1 = inlined_call_operand.vmem [shape: bf16[48,128], index: 1, kind: input, shape index: {}]   ;;  %s1355_s2 = inlined_call_operand.vmem [shape: f32[1,128], index: 2, kind: input, shape index: {}]   ;;  %s1356_s3 = inlined_call_operand.vmem [shape: f32[1,128], index: 3, kind: input, shape index: {}]   ;;  %s1357_s4 = inlined_call_operand.<no memory space> [shape: f32[1,1], index: 4, kind: input, shape index: {}]   ;;  %s1358_s5 = inlined_call_operand.vmem [shape: f32[300,1], index: 5, kind: output, shape index: {}]  }
   0x1   :  { %v10_v0 = vstv %s1357_s4 }
   0x2   :  { %11 = vst [vmem:[#allocation2] sm:$0x1] %v10_v0 }
   0x3   :  { %s1104_s20 = smov 0   ;;  %s1106_s21 = smov 0  }
   0x4   :  { %s1108_s22 = smov 0  }
   0x5 LB: > { %s1117_s4 = sadd.s32 4294967295, %s1037_s22   ;;  %s1119_s23 = sadd.s32 1, %s1037_s22   ;;  %s1037_s22 = sphi %s1108_s22, %s1365_s22   ;;  %s1033_s21 = sphi %s1106_s21, %s1364_s21   ;;  %s1029_s20 = sphi %s1104_s20, %s1363_s20  }
   0x6   : > { %s131_s24 = ssub.s32 %s1037_s22, %s1119_s23  ;;  %s134_s25 = sadd.s32 1, %s1033_s21 }
   0x7   : > { %p132_p0 = scmp.eq.s32.totalorder %s131_s24, 0  ;;  %p144_p1 = scmp.ne.s32.totalorder %s1033_s21, %s1029_s20 }
   0x8   : > { %p145_p2 = scmp.eq.s32.totalorder %s1117_s4, 2  ;;  %p815_p3 = scmp.ge.s32.totalorder %s1037_s22, 1 }
   0x9   : > { %s1127_s26 = scalar_select %p132_p0, %s1033_s21, %s134_s25  }
   0xa   : > { %p1129_p4 = por %p145_p2, %p144_p1  ;;  %p198_p5 = scmp.lt.s32.totalorder %s1037_s22, 4 }
   0xc   : > { %p199_p6 = pnand %p815_p3, %p198_p5 }
   0xd   : > { %v980_v1 = vld [vmem:[%s1354_s1] sm:$0xff] (!%p199_p6)   ;;  %s1137_s30 = sshll.u32 (!%p199_p6), %s1117_s4, 4  ;;  %v981_v2 = vld [vmem:[%s1354_s1 + $0x8] sm:$0xff] (!%p199_p6)   ;;  %v982_v3 = vld [vmem:[%s1354_s1 + $0x10] sm:$0xff] (!%p199_p6)   ;;  %vm304_vm0 = vcmask (!%p199_p6), 392192   ;;  %s226_s19 = sand.u32 (!%p199_p6), 1, %s1029_s20  }
   0xe   : > { %202 = sbr.rel (%p199_p6) target bundleno = 470 (0x1d6), region = 40  ;;  %p234_p7 = scmp.lt.s32.totalorder (!%p199_p6), %s1137_s30, 37  ;;  %864 = vmatprep.subr.bf16.mxu0 (!%p199_p6), %v980_v1  ;;  %886 = vmatprep.subr.bf16.mxu1 (!%p199_p6), %v980_v1  ;;  %v1179_v28 = vld [vmem:[%s1355_s2] ss:$0 sm:$0xff] (!%p199_p6)  ;;  %vm520_vm1 = vcmask (!%p199_p6), 7168  }
   0xf   : > { %865 = vmatpush3.bf16.msra.mxu0 (!%p199_p6), %v980_v1  ;;  %889 = vmatpush3.bf16.msra.mxu1 (!%p199_p6), %v980_v1  ;;  %v1187_v38 = vld [vmem:[%s1356_s3] ss:$0 sm:$0xff] (!%p199_p6)  ;;  %s816_s22 = sshll.u32 (!%p199_p6), %s226_s19, 7 }
  0x10   : > { %866 = vmatprep.subr.bf16.mxu0 (!%p199_p6), %v981_v2  ;;  %887 = vmatprep.subr.bf16.mxu1 (!%p199_p6), %v981_v2  ;;  %s1219_s24 = scalar_lea.vmem (!%p199_p6), [#allocation3], %s816_s22  }
  0x13   : > { %867 = vmatpush3.bf16.msra.mxu0 (!%p199_p6), %v981_v2  ;;  %890 = vmatpush3.bf16.msra.mxu1 (!%p199_p6), %v981_v2 }
  0x14   : > { %868 = vmatprep.subr.bf16.mxu0 (!%p199_p6), %v982_v3  ;;  %888 = vmatprep.subr.bf16.mxu1 (!%p199_p6), %v982_v3 }
  0x15   : > { %s235_s8 = scalar_select %p234_p7, %s1137_s30, 37 }
  0x16   : > { %s545_s20 = ssub.s32 (%p1129_p4), 38, %s1137_s30  ;;  %s850_s25 = sshll.u32 (%p1129_p4), %s1117_s4, 7 }
  0x17   : > { %s818_s11 = sshll.u32 %s235_s8, 3  ;;  %869 = vmatpush3.bf16.msra.mxu0 %v982_v3  ;;  %891 = vmatpush3.bf16.msra.mxu1 %v982_v3  ;;  %p546_p8 = scmp.lt.s32.totalorder (%p1129_p4), %s545_s20, 16 }
  0x18   : > { %s1150_s14 = scalar_lea.vmem %s1353_s0, %s818_s11  ;;  %s1260_s6 = scalar_lea.vmem (%p1129_p4), %s1358_s5, %s850_s25  }
  0x19   : > { %v249_v4 = vld [vmem:[%s1150_s14] sm:$0xff]  ;;  %v250_v5 = vld [vmem:[%s1150_s14 + $0x8] sm:$0xff]  ;;  %v251_v9 = vld [vmem:[%s1150_s14 + $0x10] sm:$0xff] }
  0x1a   : > { %v257_v6 = vld [vmem:[%s1150_s14 + $0x40] sm:$0xff]  ;;  %v265_v7 = vpack.c.bf16 %v250_v5, %v249_v4  ;;  %v258_v8 = vld [vmem:[%s1150_s14 + $0x48] sm:$0xff]  ;;  %v252_v10 = vld [vmem:[%s1150_s14 + $0x18] sm:$0xff] }
  0x1b   : > { %v269_v11 = vpack.c.bf16 %v258_v8, %v257_v6  ;;  %v259_v12 = vld [vmem:[%s1150_s14 + $0x50] sm:$0xff]  ;;  %v260_v13 = vld [vmem:[%s1150_s14 + $0x58] sm:$0xff]  ;;  %v253_v14 = vld [vmem:[%s1150_s14 + $0x20] sm:$0xff]  ;;  %v266_v15 = vpack.c.bf16 %v252_v10, %v251_v9 }
  0x1c   : > { %870 = vmatprep.mubr.msk.bf16.mxu0 %vm304_vm0, %v265_v7  ;;  %v270_v16 = vpack.c.bf16 %v260_v13, %v259_v12  ;;  %v254_v17 = vld [vmem:[%s1150_s14 + $0x28] sm:$0xff]  ;;  %v261_v19 = vld [vmem:[%s1150_s14 + $0x60] sm:$0xff]  ;;  %v255_v22 = vld [vmem:[%s1150_s14 + $0x30] sm:$0xff] }
  0x1d   : > { %v267_v18 = vpack.c.bf16 %v254_v17, %v253_v14  ;;  %v262_v20 = vld [vmem:[%s1150_s14 + $0x68] sm:$0xff]  ;;  %878 = vmatprep.mubr.msk.bf16.mxu1 %vm304_vm0, %v269_v11  ;;  %871 = vmatmul.mubr.msk.bf16.vlgmr.msra.gmra.mrb[0].mxu0 %vm304_vm0, %v266_v15  ;;  %v256_v23 = vld [vmem:[%s1150_s14 + $0x38] sm:$0xff]  ;;  %v263_v24 = vld [vmem:[%s1150_s14 + $0x70] sm:$0xff] }
  0x1e   : > { %v271_v21 = vpack.c.bf16 %v262_v20, %v261_v19  ;;  %879 = vmatmul.mubr.msk.bf16.vlgmr.msra.gmra.mrb[0].mxu1 %vm304_vm0, %v270_v16  ;;  %v264_v25 = vld [vmem:[%s1150_s14 + $0x78] sm:$0xff]  ;;  %v268_v26 = vpack.c.bf16 %v256_v23, %v255_v22 }
  0x1f   : > { %874 = vmatprep.mubr.msk.bf16.mxu0 %vm304_vm0, %v267_v18  ;;  %v272_v27 = vpack.c.bf16 %v264_v25, %v263_v24 }
  0x20   : > { %882 = vmatprep.mubr.msk.bf16.mxu1 %vm304_vm0, %v271_v21 }
  0x25   : > { %875 = vmatmul.mubr.msk.bf16.gmra.mrb[4].mxu0 %vm304_vm0, %v268_v26 }
  0x26   : > { %883 = vmatmul.mubr.msk.bf16.gmra.mrb[4].mxu1 %vm304_vm0, %v272_v27 }
  0xf0   : > { %v872_v29 = vpop.f32.mrb[0].mxu0 }
  0xf1   : > { %v880_v30 = vpop.f32.mrb[0].mxu1  ;;  %v372_v31 = vadd.f32 %v872_v29, %v1179_v28  ;;  %v363_v33 = vpop.f32.mrb[1].mxu0 }
  0xf2   : > { %v404_v32 = vadd.f32 %v880_v30, %v1179_v28  ;;  %v395_v34 = vpop.f32.mrb[1].mxu1  ;;  %v364_v35 = vadd.f32 %v1179_v28, %v363_v33  ;;  %v873_v36 = vpop.f32.mrb[2].mxu0  ;;  %v832_v30 = vld [vmem:[#allocation2] ss:$0 sm:$0xff] }
  0xf3   : > { %v881_v37 = vpop.f32.mrb[2].mxu1  ;;  %v428_v39 = vmax.f32 %v372_v31, 0.0  ;;  %v375_v41 = vadd.f32 %v873_v36, %v1179_v28  ;;  %v366_v42 = vpop.f32.mrb[3].mxu0  ;;  %v396_v44 = vadd.f32 %v1179_v28, %v395_v34 }
  0xf4   : > { %v436_v40 = vmax.f32 %v404_v32, 0.0  ;;  %v398_v43 = vpop.f32.mrb[3].mxu1  ;;  %v407_v45 = vadd.f32 %v881_v37, %v1179_v28  ;;  %v426_v46 = vmax.f32 %v364_v35, 0.0  ;;  %v367_v50 = vadd.f32 %v1179_v28, %v366_v42 }
  0xf5   : > { %v429_v47 = vmax.f32 %v375_v41, 0.0  ;;  %v451_v49 = vmul.f32 %v1187_v38, %v428_v39  ;;  %v399_v51 = vadd.f32 %v1179_v28, %v398_v43  ;;  %v434_v54 = vmax.f32 %v396_v44, 0.0 }
  0xf6   : > { %v459_v48 = vmul.f32 %v1187_v38, %v436_v40  ;;  %v437_v55 = vmax.f32 %v407_v45, 0.0  ;;  %v449_v57 = vmul.f32 %v1187_v38, %v426_v46  ;;  %v427_v0 = vmax.f32 %v367_v50, 0.0 }
  0xf7   : > { %469 = vadd.xlane.f32.xlu1 %v451_v49  ;;  %v452_v56 = vmul.f32 %v1187_v38, %v429_v47  ;;  %v435_v1 = vmax.f32 %v399_v51, 0.0  ;;  %v457_v5 = vmul.f32 %v1187_v38, %v434_v54 }
  0xf8   : > { %485 = vadd.xlane.f32.xlu0 %v459_v48  ;;  %v876_v52 = vpop.f32.mrb[4].mxu0  ;;  %v460_v4 = vmul.f32 %v1187_v38, %v437_v55  ;;  %v450_v11 = vmul.f32 %v1187_v38, %v427_v0 }
  0xf9   : > { %v884_v53 = vpop.f32.mrb[4].mxu1  ;;  %v379_v58 = vpop.f32.mrb[5].mxu0  ;;  %v388_v2 = vadd.f32 %v876_v52, %v1179_v28  ;;  %v458_v7 = vmul.f32 %v1187_v38, %v435_v1 }
  0xfa   : > { %v411_v59 = vpop.f32.mrb[5].mxu1  ;;  %v877_v60 = vpop.f32.mrb[6].mxu0  ;;  %v380_v6 = vadd.f32 %v1179_v28, %v379_v58  ;;  %v420_v18 = vadd.f32 %v884_v53, %v1179_v28 }
  0xfb   : > { %v885_v61 = vpop.f32.mrb[6].mxu1  ;;  %471 = vadd.xlane.f32.xlu1 %v452_v56  ;;  %v382_v62 = vpop.f32.mrb[7].mxu0  ;;  %v391_v3 = vadd.f32 %v877_v60, %v1179_v28  ;;  %v432_v8 = vmax.f32 %v388_v2, 0.0  ;;  %v412_v13 = vadd.f32 %v1179_v28, %v411_v59 }
  0xfc   : > { %465 = vadd.xlane.f32.xlu0 %v449_v57  ;;  %v414_v63 = vpop.f32.mrb[7].mxu1  ;;  %v383_v10 = vadd.f32 %v1179_v28, %v382_v62  ;;  %v430_v12 = vmax.f32 %v380_v6, 0.0  ;;  %v423_v19 = vadd.f32 %v885_v61, %v1179_v28  ;;  %v440_v24 = vmax.f32 %v420_v18, 0.0 }
  0xfd   : > { %v433_v9 = vmax.f32 %v391_v3, 0.0  ;;  %v415_v15 = vadd.f32 %v1179_v28, %v414_v63  ;;  %v455_v17 = vmul.f32 %v1187_v38, %v432_v8  ;;  %v438_v20 = vmax.f32 %v412_v13, 0.0 }
  0xfe   : > { %v431_v14 = vmax.f32 %v383_v10, 0.0  ;;  %v453_v23 = vmul.f32 %v1187_v38, %v430_v12  ;;  %v441_v25 = vmax.f32 %v423_v19, 0.0  ;;  %v463_v28 = vmul.f32 %v1187_v38, %v440_v24 }
  0xff   : > { %487 = vadd.xlane.f32.xlu1 %v460_v4  ;;  %v456_v16 = vmul.f32 %v1187_v38, %v433_v9  ;;  %v439_v21 = vmax.f32 %v415_v15, 0.0  ;;  %v461_v27 = vmul.f32 %v1187_v38, %v438_v20 }
 0x100   : > { %481 = vadd.xlane.f32.xlu0 %v457_v5  ;;  %v454_v22 = vmul.f32 %v1187_v38, %v431_v14  ;;  %v464_v29 = vmul.f32 %v1187_v38, %v441_v25 }
 0x101   : > { %v462_v26 = vmul.f32 %v1187_v38, %v439_v21 }
 0x103   : > { %483 = vadd.xlane.f32.xlu1 %v458_v7 }
 0x104   : > { %467 = vadd.xlane.f32.xlu0 %v450_v11 }
 0x107   : > { %479 = vadd.xlane.f32.xlu1 %v456_v16 }
 0x108   : > { %477 = vadd.xlane.f32.xlu0 %v455_v17 }
 0x10b   : > { %475 = vadd.xlane.f32.xlu1 %v454_v22 }
 0x10c   : > { %473 = vadd.xlane.f32.xlu0 %v453_v23 }
 0x10f   : > { %491 = vadd.xlane.f32.xlu1 %v462_v26 }
 0x110   : > { %489 = vadd.xlane.f32.xlu0 %v461_v27 }
 0x113   : > { %495 = vadd.xlane.f32.xlu1 %v464_v29 }
 0x114   : > { %493 = vadd.xlane.f32.xlu0 %v463_v28 }
 0x184   : > { %v470_v32 = vpop.xlane.xlu1 %469 }
 0x185   : > { %v486_v31 = vpop.xlane.xlu0 %485  ;;  %v506_v34 = vadd.f32 %v832_v30, %v470_v32 }
 0x186   : > { %v514_v33 = vadd.f32 %v832_v30, %v486_v31 }
 0x187   : > { %523 = vst.msk [vmem:[%s1219_s24 + $0x10] sm:$0xff] %vm520_vm1, %v506_v34 }
 0x188   : > { %531 = vst.msk [vmem:[%s1219_s24 + $0x50] sm:$0xff] %vm520_vm1, %v514_v33  ;;  %v472_v35 = vpop.xlane.xlu1 %471 }
 0x189   : > { %v466_v36 = vpop.xlane.xlu0 %465  ;;  %v507_v37 = vadd.f32 %v832_v30, %v472_v35 }
 0x18a   : > { %v504_v38 = vadd.f32 %v832_v30, %v466_v36 }
 0x18b   : > { %524 = vst.msk [vmem:[%s1219_s24 + $0x18] sm:$0xff] %vm520_vm1, %v507_v37 }
 0x18c   : > { %521 = vst.msk [vmem:[%s1219_s24] sm:$0xff] %vm520_vm1, %v504_v38  ;;  %v488_v39 = vpop.xlane.xlu1 %487 }
 0x18d   : > { %v482_v40 = vpop.xlane.xlu0 %481  ;;  %v515_v41 = vadd.f32 %v832_v30, %v488_v39 }
 0x18e   : > { %v512_v42 = vadd.f32 %v832_v30, %v482_v40 }
 0x18f   : > { %532 = vst.msk [vmem:[%s1219_s24 + $0x58] sm:$0xff] %vm520_vm1, %v515_v41 }
 0x190   : > { %529 = vst.msk [vmem:[%s1219_s24 + $0x40] sm:$0xff] %vm520_vm1, %v512_v42  ;;  %v484_v43 = vpop.xlane.xlu1 %483 }
 0x191   : > { %v468_v44 = vpop.xlane.xlu0 %467  ;;  %v513_v45 = vadd.f32 %v832_v30, %v484_v43 }
 0x192   : > { %v505_v46 = vadd.f32 %v832_v30, %v468_v44 }
 0x193   : > { %530 = vst.msk [vmem:[%s1219_s24 + $0x48] sm:$0xff] %vm520_vm1, %v513_v45 }
 0x194   : > { %522 = vst.msk [vmem:[%s1219_s24 + $0x8] sm:$0xff] %vm520_vm1, %v505_v46  ;;  %v480_v47 = vpop.xlane.xlu1 %479 }
 0x195   : > { %v478_v48 = vpop.xlane.xlu0 %477  ;;  %v511_v49 = vadd.f32 %v832_v30, %v480_v47 }
 0x196   : > { %v510_v50 = vadd.f32 %v832_v30, %v478_v48 }
 0x197   : > { %528 = vst.msk [vmem:[%s1219_s24 + $0x38] sm:$0xff] %vm520_vm1, %v511_v49 }
 0x198   : > { %527 = vst.msk [vmem:[%s1219_s24 + $0x30] sm:$0xff] %vm520_vm1, %v510_v50  ;;  %v476_v51 = vpop.xlane.xlu1 %475 }
 0x199   : > { %v474_v52 = vpop.xlane.xlu0 %473  ;;  %v509_v53 = vadd.f32 %v832_v30, %v476_v51 }
 0x19a   : > { %v508_v54 = vadd.f32 %v832_v30, %v474_v52 }
 0x19b   : > { %526 = vst.msk [vmem:[%s1219_s24 + $0x28] sm:$0xff] %vm520_vm1, %v509_v53 }
 0x19c   : > { %525 = vst.msk [vmem:[%s1219_s24 + $0x20] sm:$0xff] %vm520_vm1, %v508_v54  ;;  %v492_v55 = vpop.xlane.xlu1 %491 }
 0x19d   : > { %v490_v56 = vpop.xlane.xlu0 %489  ;;  %v517_v57 = vadd.f32 %v832_v30, %v492_v55 }
 0x19e   : > { %v516_v58 = vadd.f32 %v832_v30, %v490_v56  ;;  %543 = sbr.rel (!%p1129_p4) target bundleno = 470 (0x1d6), region = 44 }
 0x19f   : > { %534 = vst.msk [vmem:[%s1219_s24 + $0x68] sm:$0xff] %vm520_vm1, %v517_v57 }
 0x1a0   : > { %533 = vst.msk [vmem:[%s1219_s24 + $0x60] sm:$0xff] %vm520_vm1, %v516_v58  ;;  %v496_v59 = vpop.xlane.xlu1 %495 }
 0x1a1   : > { %v494_v60 = vpop.xlane.xlu0 %493  ;;  %v519_v61 = vadd.f32 %v832_v30, %v496_v59 }
 0x1a2   : > { %v518_v62 = vadd.f32 %v832_v30, %v494_v60 }
 0x1a3   : > { %536 = vst.msk [vmem:[%s1219_s24 + $0x78] sm:$0xff] %vm520_vm1, %v519_v61 }
 0x1a4   : > { %535 = vst.msk [vmem:[%s1219_s24 + $0x70] sm:$0xff] %vm520_vm1, %v518_v62 }
 0x1a5   : > { %s1367_s20 = smov (!%p546_p8, %s545_s20), 16 }
 0x1a6   : > { %s835_s7 = sshll.u32 %s1367_s20, 7 }
 0x1a7   : > { %p838_p9 = scmp.eq.s32.totalorder %s835_s7, 0 }
 0x1a8   : > { %s1266_s8 = sshrl.u32 (!%p838_p9), %s1367_s20, 4 }
 0x1a9   : > { %554 = sbr.rel (%p838_p9) target bundleno = 470 (0x1d6), region = 48  ;;  %p839_p10 = scmp.le.s32.totalorder (!%p838_p9), %s1266_s8, 0 }
 0x1b0   : > { %768 = sbr.rel (%p839_p10) target bundleno = 449 (0x1c1), region = 124  ;;  %s1360_s4 = smov (!%p839_p10), %s1260_s6 }
 0x1b1   : > { %s1361_s27 = smov (!%p839_p10), %s1219_s24  ;;  %s1275_s30 = smov (!%p839_p10), 0  }
 0x1b2   : > { %s1277_s9 = smov (!%p839_p10), 0  }
 0x1b7 LB: >> { %v646_v63 = vld [vmem:[%s1045_s27] sm:$0xff]  ;;  %v648_v0 = vld [vmem:[%s1045_s27 + $0x8] sm:$0xff]  ;;  %v650_v1 = vld [vmem:[%s1045_s27 + $0x10] sm:$0xff]  ;;  %s678_s10 = sadd.s32 1, %s1049_s30  ;;  %s640_s9 = sadd.s32 1, %s1053_s9   ;;  %s1053_s9 = sphi %s1277_s9, %s640_s9   ;;  %s1049_s30 = sphi %s1275_s30, %s1362_s30   ;;  %s1045_s27 = sphi %s1361_s27, %s683_s27   ;;  %s1041_s4 = sphi %s1360_s4, %s684_s4  }
 0x1b8   : >> { %647 = vst [vmem:[%s1041_s4] sm:$0xff] %v646_v63  ;;  %649 = vst [vmem:[%s1041_s4 + $0x8] sm:$0xff] %v648_v0  ;;  %v652_v2 = vld [vmem:[%s1045_s27 + $0x18] sm:$0xff]  ;;  %v654_v3 = vld [vmem:[%s1045_s27 + $0x20] sm:$0xff]  ;;  %p679_p11 = scmp.ge.s32.totalorder %s678_s10, %s1266_s8  ;;  %p639_p12 = scmp.ge.s32.totalorder %s640_s9, %s1266_s8 }
 0x1b9   : >> { %651 = vst [vmem:[%s1041_s4 + $0x10] sm:$0xff] %v650_v1  ;;  %v656_v4 = vld [vmem:[%s1045_s27 + $0x28] sm:$0xff]  ;;  %653 = vst [vmem:[%s1041_s4 + $0x18] sm:$0xff] %v652_v2  ;;  %v658_v5 = vld [vmem:[%s1045_s27 + $0x30] sm:$0xff] }
 0x1ba   : >> { %655 = vst [vmem:[%s1041_s4 + $0x20] sm:$0xff] %v654_v3  ;;  %657 = vst [vmem:[%s1041_s4 + $0x28] sm:$0xff] %v656_v4  ;;  %v660_v6 = vld [vmem:[%s1045_s27 + $0x38] sm:$0xff]  ;;  %v662_v7 = vld [vmem:[%s1045_s27 + $0x40] sm:$0xff]  ;;  %s1369_s10 = smov (%p679_p11, %s678_s10), 0  ;;  %642 = sbr.rel (!%p639_p12) target bundleno = 439 (0x1b7), region = 130 }
 0x1bb   : >> { %659 = vst [vmem:[%s1041_s4 + $0x30] sm:$0xff] %v658_v5  ;;  %661 = vst [vmem:[%s1041_s4 + $0x38] sm:$0xff] %v660_v6  ;;  %v664_v8 = vld [vmem:[%s1045_s27 + $0x48] sm:$0xff]  ;;  %v666_v9 = vld [vmem:[%s1045_s27 + $0x50] sm:$0xff]  ;;  %s840_s11 = sshll.u32 %s1369_s10, 7  ;;  %s1362_s30 = smov %s1369_s10 }
 0x1bc   : >> { %663 = vst [vmem:[%s1041_s4 + $0x40] sm:$0xff] %v662_v7  ;;  %v668_v10 = vld [vmem:[%s1045_s27 + $0x58] sm:$0xff]  ;;  %665 = vst [vmem:[%s1041_s4 + $0x48] sm:$0xff] %v664_v8  ;;  %v670_v11 = vld [vmem:[%s1045_s27 + $0x60] sm:$0xff] }
 0x1bd   : >> { %667 = vst [vmem:[%s1041_s4 + $0x50] sm:$0xff] %v666_v9  ;;  %669 = vst [vmem:[%s1041_s4 + $0x58] sm:$0xff] %v668_v10  ;;  %v672_v12 = vld [vmem:[%s1045_s27 + $0x68] sm:$0xff]  ;;  %v674_v13 = vld [vmem:[%s1045_s27 + $0x70] sm:$0xff] }
 0x1be   : >> { %671 = vst [vmem:[%s1041_s4 + $0x60] sm:$0xff] %v670_v11  ;;  %673 = vst [vmem:[%s1041_s4 + $0x68] sm:$0xff] %v672_v12  ;;  %v676_v14 = vld [vmem:[%s1045_s27 + $0x78] sm:$0xff]  ;;  %s683_s27 = scalar_lea.vmem %s1219_s24, %s840_s11 [#allocation3]  }
 0x1bf   : >> { %675 = vst [vmem:[%s1041_s4 + $0x70] sm:$0xff] %v674_v13  ;;  %677 = vst [vmem:[%s1041_s4 + $0x78] sm:$0xff] %v676_v14  ;;  %s684_s4 = scalar_lea.vmem %s1260_s6, %s840_s11  }
 0x1c1 PF: > { %s1335_s12 = sand.u32 15, %s1367_s20   ;;  %s851_s13 = sshll.u32 %s1266_s8, 7 }
 0x1c2   : > { %s689_s14 = scalar_lea.vmem %s1219_s24, %s851_s13 [#allocation3]   ;;  %s691_s15 = scalar_lea.vmem %s1260_s6, %s851_s13  }
 0x1c3   : > { %p845_p13 = scmp.le.s32.totalorder %s1335_s12, 0 }
 0x1c4   : > { %s1055_s16 = smov (!%p845_p13), %s691_s15   ;;  %s1059_s17 = smov (!%p845_p13), %s689_s14  }
 0x1c5   : > { %782 = sbr.rel (%p845_p13) target bundleno = 470 (0x1d6), region = 135  ;;  %s1063_s18 = smov (!%p845_p13), 0  }
 0x1c6   : > { %s1067_s19 = smov (!%p845_p13), 0  }
 0x1cc LB: >> { %v701_v15 = vld [vmem:[%s1061_s17] sm:$0xff]  ;;  %s703_s22 = sadd.s32 1, %s1065_s18  ;;  %s695_s19 = sadd.s32 1, %s1069_s19   ;;  %s1069_s19 = sphi %s1067_s19, %s695_s19   ;;  %s1065_s18 = sphi %s1063_s18, %s1064_s18   ;;  %s1061_s17 = sphi %s1059_s17, %s708_s17   ;;  %s1057_s16 = sphi %s1055_s16, %s709_s16  }
 0x1cd   : >> { %702 = vst [vmem:[%s1057_s16] sm:$0xff] %v701_v15  ;;  %p704_p0 = scmp.ge.s32.totalorder %s703_s22, %s1335_s12  ;;  %p694_p1 = scmp.ge.s32.totalorder %s695_s19, %s1335_s12 }
 0x1cf   : >> { %s1371_s22 = smov (%p704_p0, %s703_s22), 0  ;;  %697 = sbr.rel (!%p694_p1) target bundleno = 460 (0x1cc), region = 141 }
 0x1d0   : >> { %s846_s24 = sshll.u32 %s1371_s22, 3  ;;  %s1064_s18 = smov %s1371_s22  }
 0x1d1   : >> { %s708_s17 = scalar_lea.vmem %s689_s14, %s846_s24 [#allocation3]   ;;  %s709_s16 = scalar_lea.vmem %s691_s15, %s846_s24  }
 0x1d6 PF: > { %p14_p2 = scmp.ge.s32.totalorder %s1119_s23, 5   ;;  %s1363_s20 = smov %s1033_s21 }
 0x1d7   : > { %s1364_s21 = smov %s1127_s26  ;;  %s1365_s22 = smov %s1119_s23 }
 0x1d8   :  { %16 = sbr.rel (!%p14_p2) target bundleno = 5 (0x5), region = 152 }

</bundles_post_ra>
